<compile_context>
chip_gen: v5e
topology: v5e:2x2
jax: 0.10.0
libtpu: 0.0.40
codegen_flags: <defaults>
</compile_context>

<pallas_src>
import jax
import jax.numpy as jnp
from jax.experimental import pallas as pl
from jax.experimental.pallas import tpu as pltpu


_LANE = 128  # TPU lane width; Cout is padded to a multiple of this for lane-dense stores.


def _round_up(n, m):
    return ((n + m - 1) // m) * m


def _pad_axis_to(a, axis, size):
    pad = [(0, 0)] * a.ndim
    pad[axis] = (0, size - a.shape[axis])
    return jnp.pad(a, pad)


def _pick_block(n, max_block):
    """Largest divisor of n that is <= max_block."""
    for b in range(min(n, max_block), 0, -1):
        if n % b == 0:
            return b
    return 1


def _vmem_limit_bytes():
    """Scoped-VMEM limit derived from the current TPU generation (with headroom)."""
    try:
        cap = pltpu.get_tpu_info().vmem_capacity_bytes
    except Exception:
        cap = 64 * 1024 * 1024          # conservative fallback (v7x-sized)
    return max(32 * 1024 * 1024, min(int(cap * 0.6), 100 * 1024 * 1024))


def _pick_depth_block(d, h, w, cin, cp, itemsize, budget_bytes, max_td=4):
    """Largest divisor of d (<= max_td) whose per-step VMEM footprint fits the budget."""
    cin_lanes = _round_up(max(cin, 1), _LANE)   # lane padding of the padded scratch tile
    for td in range(min(d, max_td), 0, -1):
        if d % td:
            continue
        fp = (2 * (td + 2) * h * w * cin * itemsize                   # inputs (2 bufs)
              + 2 * td * h * w * cp * itemsize                        # output (2 bufs)
              + (td + 2) * (h + 2) * (w + 2) * cin_lanes * itemsize   # padded scratch
              + 2 * td * h * w * cp * 4)                              # f32 acc + dot temp
        if fp <= budget_bytes:
            return td
    return 1   # TODO(synk): H-tiling needed if even TD=1 does not fit the budget.


# --------------------------- MaxPool3d(kernel=2, stride=2) ---------------------------

def _maxpool_kernel(x_ref, o_ref):
    """x_ref: (1, 2*TDp, H, Wo, 2C)  (wrapper pre-reshaped (...,W,C) -> (...,Wo,2C));
    o_ref: (1, TDp, Ho, Wo, C)."""
    TDp, Ho, Wo, C = o_ref.shape[1], o_ref.shape[2], o_ref.shape[3], o_ref.shape[4]
    v = x_ref[0]                                        # (2*TDp, 2*Ho, Wo, 2C)
    v = v.reshape(TDp, 2, 2 * Ho, Wo, 2 * C)            # leading-dim split (free)
    v = jnp.maximum(v[:, 0], v[:, 1])                   # depth pairs  -> (TDp, 2Ho, Wo, 2C)
    v = v.reshape(TDp, Ho, 2, Wo, 2 * C)                # split H (minor dims unchanged)
    v = jnp.maximum(v[:, :, 0], v[:, :, 1])             # H pairs      -> (TDp, Ho, Wo, 2C)
    o_ref[0] = jnp.maximum(v[..., :C], v[..., C:])      # W pairs: lane-contiguous slices


def maxpool3d_2(x):
    """x: (B, D, H, W, C) -> (B, D//2, H//2, W//2, C). Assumes even D, H, W."""
    B, D, H, W, C = x.shape
    assert D % 2 == 0 and H % 2 == 0 and W % 2 == 0
    Do, Ho, Wo = D // 2, H // 2, W // 2
    TDp = _pick_block(Do, 4)                             # several pooled planes per step
    xr = x.reshape(B, D, H, Wo, 2 * C)                   # metadata-only reshape
    return pl.pallas_call(
        _maxpool_kernel,
        out_shape=jax.ShapeDtypeStruct((B, Do, Ho, Wo, C), x.dtype),
        grid_spec=pltpu.PrefetchScalarGridSpec(
            num_scalar_prefetch=0,
            grid=(B, Do // TDp),
            in_specs=[pl.BlockSpec((1, 2 * TDp, H, Wo, 2 * C),
                                   lambda b, d: (b, d, 0, 0, 0))],
            out_specs=pl.BlockSpec((1, TDp, Ho, Wo, C),
                                   lambda b, d: (b, d, 0, 0, 0)),
        ),
        compiler_params=pltpu.CompilerParams(
            dimension_semantics=("parallel", "parallel")),
    )(xr)


# ----------------------- fused Conv3d(3, pad=1) + BN(eval) + ReLU --------------------

def _conv_bn_relu_kernel(x_main_ref, x_lo_ref, x_hi_ref, w_ref, scale_ref, bias_ref,
                         o_ref, xp_ref):
    """One grid step = one (batch, TD-deep output depth block).

    x_main_ref: (1, TD, H, W, Cin)   input planes [db*TD, db*TD+TD)
    x_lo_ref:   (1, 1, H, W, Cin)    plane db*TD-1 (clamped; zeroed when db == 0)
    x_hi_ref:   (1, 1, H, W, Cin)    plane db*TD+TD (clamped; zeroed when db is last)
    w_ref:      (27, Cin, Cp)        weight taps, first axis in (kd, kh, kw) order
    scale_ref:  (1, Cp)              folded BN scale (f32)
    bias_ref:   (1, Cp)              folded BN bias incl. conv bias (f32)
    o_ref:      (1, TD, H, W, Cp)
    xp_ref:     (TD+2, H+2, W+2, Cin) VMEM scratch — zero-padded input window
    """
    TD, H, W, Cp = o_ref.shape[1], o_ref.shape[2], o_ref.shape[3], o_ref.shape[4]
    Cin = x_main_ref.shape[-1]
    db = pl.program_id(1)
    nd = pl.num_programs(1)

    # --- assemble the zero-padded (TD+2, H+2, W+2, Cin) window in VMEM ---------------
    # (full zero each step keeps the edge handling trivially correct; could be
    #  narrowed to border-only zeroing if the vst slot ever becomes binding here).
    xp_ref[...] = jnp.zeros_like(xp_ref)
    xp_ref[1:TD + 1, 1:H + 1, 1:W + 1, :] = x_main_ref[0]

    @pl.when(db > 0)
    def _():
        xp_ref[0, 1:H + 1, 1:W + 1, :] = x_lo_ref[0, 0]

    @pl.when(db < nd - 1)
    def _():
        xp_ref[TD + 1, 1:H + 1, 1:W + 1, :] = x_hi_ref[0, 0]

    # --- 27 accumulating MXU matmuls (K = Cin) over shifted views --------------------
    M = TD * H * W
    acc = None
    for kd in range(3):
        for kh in range(3):
            for kw in range(3):
                lhs = xp_ref[kd:kd + TD, kh:kh + H, kw:kw + W, :].reshape(M, Cin)
                part = jax.lax.dot_general(
                    lhs, w_ref[kd * 9 + kh * 3 + kw],
                    (((1,), (0,)), ((), ())),
                    preferred_element_type=jnp.float32)
                acc = part if acc is None else acc + part

    # --- folded eval BatchNorm + ReLU on the f32 accumulator, lane-dense store -------
    y = acc * scale_ref[...] + bias_ref[...]
    y = jnp.maximum(y, 0.0)
    o_ref[0] = y.reshape(TD, H, W, Cp).astype(o_ref.dtype)


def conv3d_bn_relu(x, w3d, scale, bias, out_dtype):
    """x: (B, D, H, W, Cin); w3d: (27, Cin, Cp) taps in (kd, kh, kw) order;
    scale/bias: (Cp,) f32.  Returns (B, D, H, W, Cp) in out_dtype."""
    B, D, H, W, Cin = x.shape
    taps, wcin, Cp = w3d.shape
    assert taps == 27 and wcin == Cin and Cp % _LANE == 0

    vmem_limit = _vmem_limit_bytes()
    itemsize = jnp.dtype(x.dtype).itemsize
    TD = _pick_depth_block(D, H, W, Cin, Cp, itemsize, vmem_limit // 2, max_td=4)

    scale2 = scale.reshape(1, Cp).astype(jnp.float32)
    bias2 = bias.reshape(1, Cp).astype(jnp.float32)

    main_spec = pl.BlockSpec((1, TD, H, W, Cin), lambda b, d: (b, d, 0, 0, 0))
    # Halo planes: block size 1 along depth -> index map returns the plane index
    # directly; clamped at the volume edges and zeroed in-kernel there.
    lo_spec = pl.BlockSpec((1, 1, H, W, Cin),
                           lambda b, d: (b, jnp.maximum(d * TD - 1, 0), 0, 0, 0))
    hi_spec = pl.BlockSpec((1, 1, H, W, Cin),
                           lambda b, d: (b, jnp.minimum(d * TD + TD, D - 1), 0, 0, 0))

    grid_spec = pltpu.PrefetchScalarGridSpec(
        num_scalar_prefetch=0,
        grid=(B, D // TD),
        in_specs=[
            main_spec, lo_spec, hi_spec,
            pl.BlockSpec((27, Cin, Cp), lambda b, d: (0, 0, 0)),   # weights (constant)
            pl.BlockSpec((1, Cp), lambda b, d: (0, 0)),            # folded BN scale
            pl.BlockSpec((1, Cp), lambda b, d: (0, 0)),            # folded BN bias
        ],
        out_specs=pl.BlockSpec((1, TD, H, W, Cp), lambda b, d: (b, d, 0, 0, 0)),
        scratch_shapes=[pltpu.VMEM((TD + 2, H + 2, W + 2, Cin), x.dtype)],
    )
    return pl.pallas_call(
        _conv_bn_relu_kernel,
        out_shape=jax.ShapeDtypeStruct((B, D, H, W, Cp), out_dtype),
        grid_spec=grid_spec,
        compiler_params=pltpu.CompilerParams(
            dimension_semantics=("parallel", "parallel"),
            vmem_limit_bytes=vmem_limit),
    )(x, x, x, w3d, scale2, bias2)


# --------------------------------- _Down forward -------------------------------------

def _fold_bn(conv_bias, gamma, beta, mean, var, eps=1e-5):
    """Fold Conv3d bias + eval-mode BatchNorm3d into per-channel scale / bias."""
    scale = gamma / jnp.sqrt(var + eps)
    bias = scale * (conv_bias - mean) + beta
    return scale.astype(jnp.float32), bias.astype(jnp.float32)


def _prep_conv(w_dhwio, scale, bias, cin_pad, cout_pad, compute_dtype):
    """Zero-pad channels and reshape weights to (27, cin_pad, cout_pad), taps (kd,kh,kw)."""
    w = _pad_axis_to(w_dhwio, 3, cin_pad)      # extra input channels see zero activations
    w = _pad_axis_to(w, 4, cout_pad)           # zero cols + zero scale/bias -> pad chans == 0
    w3d = w.reshape(27, cin_pad, cout_pad).astype(compute_dtype)
    return (w3d,
            _pad_axis_to(scale, 0, cout_pad),
            _pad_axis_to(bias, 0, cout_pad))


def down_forward(x_ncdhw, params, compute_dtype=jnp.bfloat16):
    """_Down forward (eval mode): MaxPool3d(2) -> (Conv3d + BN + ReLU) x 2.

    x_ncdhw: (B, C_in, D, H, W)  ->  (B, C_out, D//2, H//2, W//2) float32.
    """
    x = jnp.transpose(x_ncdhw, (0, 2, 3, 4, 1)).astype(compute_dtype)   # NCDHW -> NDHWC
    x = maxpool3d_2(x)

    (w1, b1, g1, be1, m1, v1), (w2, b2, g2, be2, m2, v2) = params
    cin1, cout = w1.shape[3], w1.shape[4]
    cp = _round_up(cout, _LANE)                     # lane-dense output channels

    s1, bb1 = _fold_bn(b1, g1, be1, m1, v1)
    s2, bb2 = _fold_bn(b2, g2, be2, m2, v2)
    w1_3d, s1p, bb1p = _prep_conv(w1, s1, bb1, cin1, cp, compute_dtype)
    w2_3d, s2p, bb2p = _prep_conv(w2, s2, bb2, cp, cp, compute_dtype)

    y = conv3d_bn_relu(x, w1_3d, s1p, bb1p, out_dtype=compute_dtype)    # conv1+bn1+relu
    y = conv3d_bn_relu(y, w2_3d, s2p, bb2p, out_dtype=compute_dtype)    # conv2+bn2+relu

    y = y[..., :cout]                               # drop channel padding (pad chans are 0)
    y = jnp.transpose(y, (0, 4, 1, 2, 3))           # back to NCDHW (still compute dtype)
    return y.astype(jnp.float32)


# ----------------------- pure-JAX reference (correctness only) -----------------------

def _ref_down(x_ncdhw, params, compute_dtype=jnp.bfloat16, eps=1e-5):
    x = jnp.transpose(x_ncdhw, (0, 2, 3, 4, 1)).astype(compute_dtype)
    B, D, H, W, C = x.shape
    x = x.reshape(B, D // 2, 2, H // 2, 2, W // 2, 2, C).max(axis=(2, 4, 6))

    def conv_bn_relu(x, p, out_dtype):
        w, b, g, be, m, v = p
        scale = g / jnp.sqrt(v + eps)
        bias = scale * (b - m) + be
        y = jax.lax.conv_general_dilated(
            x, w.astype(compute_dtype), window_strides=(1, 1, 1), padding="SAME",
            dimension_numbers=("NDHWC", "DHWIO", "NDHWC"),
            preferred_element_type=jnp.float32)
        y = y * scale + bias
        return jnp.maximum(y, 0.0).astype(out_dtype)

    p1, p2 = params
    x = conv_bn_relu(x, p1, compute_dtype)
    x = conv_bn_relu(x, p2, compute_dtype)
    return jnp.transpose(x, (0, 4, 1, 2, 3)).astype(jnp.float32)


def _init_params(key, c_in, c_out):
    """Deterministic synthetic parameters (shapes follow nn.Conv3d / nn.BatchNorm3d)."""
    ks = jax.random.split(key, 10)

    def conv_bn(k_w, k_b, k_g, k_be, k_m, k_v, cin, cout):
        w = 0.1 * jax.random.normal(k_w, (3, 3, 3, cin, cout), jnp.float32)  # DHWIO
        b = 0.05 * jax.random.normal(k_b, (cout,), jnp.float32)
        gamma = 1.0 + 0.1 * jax.random.normal(k_g, (cout,), jnp.float32)
        beta = 0.1 * jax.random.normal(k_be, (cout,), jnp.float32)
        mean = 0.05 * jax.random.normal(k_m, (cout,), jnp.float32)
        var = 1.0 + 0.1 * jax.random.uniform(k_v, (cout,), jnp.float32)
        return (w, b, gamma, beta, mean, var)

    p1 = conv_bn(*ks[0:6], c_in, c_out)
    k7 = jax.random.split(ks[6], 6)
    p2 = conv_bn(*k7, c_out, c_out)
    return (p1, p2)


if __name__ == "__main__":
    key = jax.random.PRNGKey(0)
    k_x, k_p = jax.random.split(key)

    B, C_IN, C_OUT = 2, 4, 8
    D = H = W = 16                                   # _Down halves spatial dims to 8
    x = jax.random.normal(k_x, (B, C_IN, D, H, W), jnp.float32)   # PyTorch NCDHW
    params = _init_params(k_p, C_IN, C_OUT)

    # f32 path: tight correctness check against the pure-JAX reference.
    out32 = jax.block_until_ready(down_forward(x, params, compute_dtype=jnp.float32))
    ref32 = _ref_down(x, params, compute_dtype=jnp.float32)
    assert out32.shape == (B, C_OUT, D // 2, H // 2, W // 2), out32.shape
    assert jnp.allclose(out32, ref32, atol=1e-3, rtol=1e-3), float(
        jnp.max(jnp.abs(out32 - ref32)))

    # bf16 path (performance configuration): compare against a bf16-matched reference.
    out16 = jax.block_until_ready(down_forward(x, params, compute_dtype=jnp.bfloat16))
    ref16 = _ref_down(x, params, compute_dtype=jnp.bfloat16)
    assert out16.shape == (B, C_OUT, D // 2, H // 2, W // 2), out16.shape
    assert jnp.allclose(out16, ref16, atol=5e-2, rtol=5e-2), float(
        jnp.max(jnp.abs(out16 - ref16)))

    print("KERNEL_OK")
</pallas_src>

<mosaic_0001>
module attributes {stable_mosaic.version = 11 : i64} {
  func.func @_maxpool_kernel(%arg0: i32, %arg1: i32, %arg2: memref<1x8x16x8x8xf32, #tpu.memory_space<vmem>>, %arg3: memref<1x4x8x8x4xf32, #tpu.memory_space<vmem>>) attributes {dimension_semantics = [#tpu.dimension_semantics<parallel>, #tpu.dimension_semantics<parallel>], iteration_bounds = array<i64: 2, 2>, scalar_prefetch = 0 : i64, scratch_operands = 0 : i64, tpu.core_type = #tpu.core_type<tc>, window_params = [{transform_indices = @transform_0, window_bounds = array<i64: 1, 8, 16, 8, 8>}, {transform_indices = @transform_1, window_bounds = array<i64: 1, 4, 8, 8, 4>}]} {
    %c0 = arith.constant 0 : index
    %c0_0 = arith.constant 0 : index
    %c0_1 = arith.constant 0 : index
    %c0_2 = arith.constant 0 : index
    %c0_3 = arith.constant 0 : index
    %0 = vector.load %arg2[%c0, %c0_0, %c0_1, %c0_2, %c0_3] : memref<1x8x16x8x8xf32, #tpu.memory_space<vmem>>, vector<1x8x16x8x8xf32>
    %1 = vector.shape_cast %0 : vector<1x8x16x8x8xf32> to vector<8x16x8x8xf32>
    %2 = vector.shape_cast %1 : vector<8x16x8x8xf32> to vector<4x2x16x8x8xf32>
    %3 = vector.extract_strided_slice %2 {offsets = [0, 0, 0, 0, 0], sizes = [4, 1, 16, 8, 8], strides = [1, 1, 1, 1, 1]} : vector<4x2x16x8x8xf32> to vector<4x1x16x8x8xf32>
    %4 = vector.shape_cast %3 : vector<4x1x16x8x8xf32> to vector<4x16x8x8xf32>
    %5 = vector.extract_strided_slice %2 {offsets = [0, 1, 0, 0, 0], sizes = [4, 1, 16, 8, 8], strides = [1, 1, 1, 1, 1]} : vector<4x2x16x8x8xf32> to vector<4x1x16x8x8xf32>
    %6 = vector.shape_cast %5 : vector<4x1x16x8x8xf32> to vector<4x16x8x8xf32>
    %7 = arith.maximumf %4, %6 : vector<4x16x8x8xf32>
    %8 = vector.shape_cast %7 : vector<4x16x8x8xf32> to vector<4x8x2x8x8xf32>
    %9 = vector.extract_strided_slice %8 {offsets = [0, 0, 0, 0, 0], sizes = [4, 8, 1, 8, 8], strides = [1, 1, 1, 1, 1]} : vector<4x8x2x8x8xf32> to vector<4x8x1x8x8xf32>
    %10 = vector.shape_cast %9 : vector<4x8x1x8x8xf32> to vector<4x8x8x8xf32>
    %11 = vector.extract_strided_slice %8 {offsets = [0, 0, 1, 0, 0], sizes = [4, 8, 1, 8, 8], strides = [1, 1, 1, 1, 1]} : vector<4x8x2x8x8xf32> to vector<4x8x1x8x8xf32>
    %12 = vector.shape_cast %11 : vector<4x8x1x8x8xf32> to vector<4x8x8x8xf32>
    %13 = arith.maximumf %10, %12 : vector<4x8x8x8xf32>
    %14 = vector.extract_strided_slice %13 {offsets = [0, 0, 0, 0], sizes = [4, 8, 8, 4], strides = [1, 1, 1, 1]} : vector<4x8x8x8xf32> to vector<4x8x8x4xf32>
    %15 = vector.extract_strided_slice %13 {offsets = [0, 0, 0, 4], sizes = [4, 8, 8, 4], strides = [1, 1, 1, 1]} : vector<4x8x8x8xf32> to vector<4x8x8x4xf32>
    %16 = arith.maximumf %14, %15 : vector<4x8x8x4xf32>
    %c0_4 = arith.constant 0 : index
    %c0_5 = arith.constant 0 : index
    %c0_6 = arith.constant 0 : index
    %c0_7 = arith.constant 0 : index
    %c0_8 = arith.constant 0 : index
    %17 = vector.load %arg3[%c0_4, %c0_5, %c0_6, %c0_7, %c0_8] : memref<1x4x8x8x4xf32, #tpu.memory_space<vmem>>, vector<1x4x8x8x4xf32>
    %18 = vector.shape_cast %17 : vector<1x4x8x8x4xf32> to vector<4x8x8x4xf32>
    %19 = vector.shape_cast %16 : vector<4x8x8x4xf32> to vector<1x4x8x8x4xf32>
    tpu.vector_store %arg3[%c0_4, %c0_5, %c0_6, %c0_7, %c0_8], %19 {strides = array<i32>} : memref<1x4x8x8x4xf32, #tpu.memory_space<vmem>>, vector<1x4x8x8x4xf32>,
    return
  }
  func.func @transform_0(%arg0: i32, %arg1: i32) -> (i32, i32, i32, i32, i32) {
    %c0_i32 = arith.constant 0 : i32
    %c0_i32_0 = arith.constant 0 : i32
    %c0_i32_1 = arith.constant 0 : i32
    %c0_i32_2 = arith.constant 0 : i32
    return %arg0, %arg1, %c0_i32, %c0_i32_0, %c0_i32_1 : i32, i32, i32, i32, i32
  }
  func.func @transform_1(%arg0: i32, %arg1: i32) -> (i32, i32, i32, i32, i32) {
    %c0_i32 = arith.constant 0 : i32
    %c0_i32_0 = arith.constant 0 : i32
    %c0_i32_1 = arith.constant 0 : i32
    %c0_i32_2 = arith.constant 0 : i32
    return %arg0, %arg1, %c0_i32, %c0_i32_0, %c0_i32_1 : i32, i32, i32, i32, i32
  }
}

</mosaic_0001>

<bundles_post_ra>
// kernel: tpu_custom_call.1
= control target key start
LH: loop header
LB: loop body
LE: loop exit
PB: predicated region body
PF: predicated region fallthrough
CT: control target
= control target key end

     0   :  { %s784_s6 = smov 0   ;;  %s786_s7 = smov 0   ;;  %s1199_s0 = inlined_call_operand.vmem [shape: f32[2,16,16,8,8], index: 0, kind: input, shape index: {}]   ;;  %s1200_s1 = inlined_call_operand.vmem [shape: f32[2,8,8,8,4], index: 1, kind: output, shape index: {}]  }
   0x1   :  { %s788_s8 = smov 0   ;;  %s790_s9 = smov 0  }
   0x2   :  { %s792_s10 = smov 0  }
   0x3 LB: > { %s20_s11 = sadd.s32 1, %s763_s8  ;;  %s23_s12 = sadd.s32 1, %s767_s9  ;;  %s771_s10 = sphi %s792_s10, %s11_s10   ;;  %s767_s9 = sphi %s790_s9, %s1204_s9   ;;  %s763_s8 = sphi %s788_s8, %s1203_s8   ;;  %s759_s7 = sphi %s786_s7, %s1202_s7   ;;  %s755_s6 = sphi %s784_s6, %s1201_s6  }
   0x4   : > { %p21_p0 = scmp.ge.s32.totalorder %s20_s11, 2  ;;  %p681_p1 = scmp.ge.s32.totalorder %s771_s10, 1 }
   0x5   : > { %p109_p2 = scmp.lt.s32.totalorder %s771_s10, 5 }
   0x6   : > { %s1206_s11 = smov (%p21_p0, %s20_s11), 0  ;;  %s1208_s12 = smov (!%p21_p0, %s23_s12), %s767_s9 }
   0x7   : > { %p110_p3 = pnand %p681_p1, %p109_p2  ;;  %p25_p4 = scmp.ge.s32.totalorder %s1208_s12, 2 }
   0x8   : > { %s682_s13 = sshll.u32 (!%p110_p3), %s755_s6, 3  ;;  %p140_p5 = scmp.lt.s32.totalorder (!%p110_p3), %s759_s7, 1 }
   0x9   : > { %s1210_s12 = smov (%p25_p4, %s1208_s12), 0  ;;  %113 = sbr.rel (%p110_p3) target bundleno = 225 (0xe1), region = 24 }
   0xa   : > { %p142_p6 = scmp.lt.s32.totalorder (!%p110_p3), %s682_s13, 15  ;;  %s773_s21 = smov (!%p110_p3), 124  }
   0xb   : > { %s686_s22 = sshll.u32 (!%p110_p3), %s755_s6, 2 }
   0xc   : > { %p153_p7 = scmp.lt.s32.totalorder (!%p110_p3), %s686_s22, 7 }
   0xe   : > { %s1212_s7 = smov (!%p140_p5, %s759_s7), 1  ;;  %s1214_s13 = smov (!%p142_p6, %s682_s13), 15  ;;  %vm545_vm0 = vcmask 31744  }
   0xf   : > { %s684_s14 = sshll.u32 %s1212_s7, 8  ;;  %s683_s15 = sshll.u32 %s1214_s13, 4 }
  0x10   : > { %s146_s16 = sadd.s32 %s684_s14, %s683_s15  ;;  %s1216_s22 = smov (!%p153_p7, %s686_s22), 7 }
  0x11   : > { %s685_s17 = sshll.u32 %s146_s16, 3  ;;  %s687_s23 = sshll.u32 %s1216_s22, 3 }
  0x12   : > { %s823_s20 = scalar_lea.vmem %s1199_s0, %s685_s17  ;;  %s688_s24 = sshll.u32 %s1212_s7, 6 }
  0x13   : > { %v165_v0 = vld [vmem:[%s823_s20 + $0x20] sm:$0xff]  ;;  %v166_v1 = vld [vmem:[%s823_s20 + $0x28] sm:$0xff]  ;;  %v167_v10 = vld [vmem:[%s823_s20 + $0x30] sm:$0xff]  ;;  %s157_s25 = sadd.s32 %s688_s24, %s687_s23 }
  0x14   : > { %v181_v2 = vld [vmem:[%s823_s20 + $0xa0] sm:$0xff]  ;;  %v182_v3 = vld [vmem:[%s823_s20 + $0xa8] sm:$0xff]  ;;  %v168_v13 = vld [vmem:[%s823_s20 + $0x38] sm:$0xff]  ;;  %s689_s26 = sshll.u32 %s157_s25, 3 }
  0x15   : > { %v293_v4 = vmax.f32 %v165_v0, %v181_v2  ;;  %v161_v5 = vld [vmem:[%s823_s20] sm:$0xff]  ;;  %v162_v6 = vld [vmem:[%s823_s20 + $0x8] sm:$0xff]  ;;  %v294_v7 = vmax.f32 %v166_v1, %v182_v3  ;;  %v183_v14 = vld [vmem:[%s823_s20 + $0xb0] sm:$0xff]  ;;  %s1087_s29 = scalar_lea.vmem %s1200_s1, %s689_s26 }
  0x16   : > { %v177_v8 = vld [vmem:[%s823_s20 + $0x80] sm:$0xff]  ;;  %v178_v9 = vld [vmem:[%s823_s20 + $0x88] sm:$0xff]  ;;  %v184_v15 = vld [vmem:[%s823_s20 + $0xb8] sm:$0xff]  ;;  %v295_v22 = vmax.f32 %v167_v10, %v183_v14 }
  0x17   : > { %v289_v11 = vmax.f32 %v161_v5, %v177_v8  ;;  %v290_v12 = vmax.f32 %v162_v6, %v178_v9  ;;  %v837_v16 = vmax.f32 %v293_v4, %v294_v7  ;;  %v163_v17 = vld [vmem:[%s823_s20 + $0x10] sm:$0xff]  ;;  %v164_v18 = vld [vmem:[%s823_s20 + $0x18] sm:$0xff]  ;;  %v296_v23 = vmax.f32 %v168_v13, %v184_v15  ;;  %v173_v31 = vld [vmem:[%s823_s20 + $0x60] sm:$0xff] }
  0x18   : > { %v179_v19 = vld [vmem:[%s823_s20 + $0x90] sm:$0xff]  ;;  %v180_v21 = vld [vmem:[%s823_s20 + $0x98] sm:$0xff]  ;;  %v169_v32 = vld [vmem:[%s823_s20 + $0x40] sm:$0xff] }
  0x19   : > { %v842_v20 = vmax.f32 %v289_v11, %v290_v12  ;;  %421 = vrot.lane.b32.xlu1 %v837_v16, %s773_s21  ;;  %v291_v24 = vmax.f32 %v163_v17, %v179_v19  ;;  %v292_v25 = vmax.f32 %v164_v18, %v180_v21  ;;  %v175_v26 = vld [vmem:[%s823_s20 + $0x70] sm:$0xff]  ;;  %v176_v27 = vld [vmem:[%s823_s20 + $0x78] sm:$0xff]  ;;  %v852_v29 = vmax.f32 %v295_v22, %v296_v23  ;;  %v170_v34 = vld [vmem:[%s823_s20 + $0x48] sm:$0xff] }
  0x1a   : > { %v191_v28 = vld [vmem:[%s823_s20 + $0xf0] sm:$0xff]  ;;  %v192_v30 = vld [vmem:[%s823_s20 + $0xf8] sm:$0xff]  ;;  %v185_v35 = vld [vmem:[%s823_s20 + $0xc0] sm:$0xff] }
  0x1b   : > { %417 = vrot.lane.b32.xlu0 %v842_v20, %s773_s21  ;;  %v857_v33 = vmax.f32 %v291_v24, %v292_v25  ;;  %v186_v36 = vld [vmem:[%s823_s20 + $0xc8] sm:$0xff]  ;;  %v189_v38 = vld [vmem:[%s823_s20 + $0xe0] sm:$0xff]  ;;  %v297_v40 = vmax.f32 %v169_v32, %v185_v35  ;;  %v303_v42 = vmax.f32 %v175_v26, %v191_v28  ;;  %v304_v43 = vmax.f32 %v176_v27, %v192_v30  ;;  %v171_v45 = vld [vmem:[%s823_s20 + $0x50] sm:$0xff] }
  0x1c   : > { %v174_v37 = vld [vmem:[%s823_s20 + $0x68] sm:$0xff]  ;;  %v298_v41 = vmax.f32 %v170_v34, %v186_v36  ;;  %v301_v46 = vmax.f32 %v173_v31, %v189_v38  ;;  %v172_v48 = vld [vmem:[%s823_s20 + $0x58] sm:$0xff]  ;;  %v187_v49 = vld [vmem:[%s823_s20 + $0xd0] sm:$0xff] }
  0x1d   : > { %v190_v39 = vld [vmem:[%s823_s20 + $0xe8] sm:$0xff]  ;;  %v188_v50 = vld [vmem:[%s823_s20 + $0xd8] sm:$0xff]  ;;  %v299_v51 = vmax.f32 %v171_v45, %v187_v49  ;;  %v877_v53 = vmax.f32 %v303_v42, %v304_v43  ;;  %v197_v54 = vld [vmem:[%s823_s20 + $0x120] sm:$0xff] }
  0x1e   : > { %v867_v44 = vmax.f32 %v297_v40, %v298_v41  ;;  %v302_v47 = vmax.f32 %v174_v37, %v190_v39  ;;  %v300_v52 = vmax.f32 %v172_v48, %v188_v50  ;;  %v198_v55 = vld [vmem:[%s823_s20 + $0x128] sm:$0xff]  ;;  %v213_v56 = vld [vmem:[%s823_s20 + $0x1a0] sm:$0xff]  ;;  %v195_v59 = vld [vmem:[%s823_s20 + $0x110] sm:$0xff] }
  0x1f   : > { %v214_v58 = vld [vmem:[%s823_s20 + $0x1a8] sm:$0xff]  ;;  %v196_v60 = vld [vmem:[%s823_s20 + $0x118] sm:$0xff]  ;;  %v211_v61 = vld [vmem:[%s823_s20 + $0x190] sm:$0xff]  ;;  %v309_v4 = vmax.f32 %v197_v54, %v213_v56 }
  0x20   : > { %425 = vrot.lane.b32.xlu2 %v867_v44, %s773_s21  ;;  %v882_v57 = vmax.f32 %v301_v46, %v302_v47  ;;  %v212_v62 = vld [vmem:[%s823_s20 + $0x198] sm:$0xff]  ;;  %v889_v63 = vmax.f32 %v299_v51, %v300_v52  ;;  %v193_v0 = vld [vmem:[%s823_s20 + $0x100] sm:$0xff]  ;;  %v194_v1 = vld [vmem:[%s823_s20 + $0x108] sm:$0xff]  ;;  %v310_v5 = vmax.f32 %v198_v55, %v214_v58  ;;  %v307_v6 = vmax.f32 %v195_v59, %v211_v61 }
  0x21   : > { %423 = vrot.lane.b32.xlu1 %v852_v29, %s773_s21  ;;  %v209_v2 = vld [vmem:[%s823_s20 + $0x180] sm:$0xff]  ;;  %v210_v3 = vld [vmem:[%s823_s20 + $0x188] sm:$0xff]  ;;  %v308_v7 = vmax.f32 %v196_v60, %v212_v62  ;;  %v203_v11 = vld [vmem:[%s823_s20 + $0x150] sm:$0xff] }
  0x22   : > { %v305_v8 = vmax.f32 %v193_v0, %v209_v2  ;;  %v306_v9 = vmax.f32 %v194_v1, %v210_v3  ;;  %v901_v10 = vmax.f32 %v309_v4, %v310_v5  ;;  %v204_v12 = vld [vmem:[%s823_s20 + $0x158] sm:$0xff]  ;;  %v219_v13 = vld [vmem:[%s823_s20 + $0x1d0] sm:$0xff]  ;;  %v201_v17 = vld [vmem:[%s823_s20 + $0x140] sm:$0xff] }
  0x23   : > { %419 = vrot.lane.b32.xlu0 %v857_v33, %s773_s21  ;;  %v906_v14 = vmax.f32 %v307_v6, %v308_v7  ;;  %v220_v15 = vld [vmem:[%s823_s20 + $0x1d8] sm:$0xff]  ;;  %v202_v18 = vld [vmem:[%s823_s20 + $0x148] sm:$0xff]  ;;  %v217_v19 = vld [vmem:[%s823_s20 + $0x1c0] sm:$0xff]  ;;  %v315_v27 = vmax.f32 %v203_v11, %v219_v13 }
  0x24   : > { %v218_v21 = vld [vmem:[%s823_s20 + $0x1c8] sm:$0xff]  ;;  %v913_v22 = vmax.f32 %v305_v8, %v306_v9  ;;  %v199_v23 = vld [vmem:[%s823_s20 + $0x130] sm:$0xff]  ;;  %v200_v24 = vld [vmem:[%s823_s20 + $0x138] sm:$0xff]  ;;  %v316_v28 = vmax.f32 %v204_v12, %v220_v15  ;;  %v313_v30 = vmax.f32 %v201_v17, %v217_v19 }
  0x25   : > { %v215_v25 = vld [vmem:[%s823_s20 + $0x1b0] sm:$0xff]  ;;  %v216_v26 = vld [vmem:[%s823_s20 + $0x1b8] sm:$0xff]  ;;  %v314_v31 = vmax.f32 %v202_v18, %v218_v21  ;;  %v225_v36 = vld [vmem:[%s823_s20 + $0x200] sm:$0xff] }
  0x26   : > { %v311_v32 = vmax.f32 %v199_v23, %v215_v25  ;;  %v312_v34 = vmax.f32 %v200_v24, %v216_v26  ;;  %v925_v35 = vmax.f32 %v315_v27, %v316_v28  ;;  %v226_v37 = vld [vmem:[%s823_s20 + $0x208] sm:$0xff]  ;;  %v241_v38 = vld [vmem:[%s823_s20 + $0x280] sm:$0xff]  ;;  %v207_v41 = vld [vmem:[%s823_s20 + $0x170] sm:$0xff] }
  0x27   : > { %v930_v39 = vmax.f32 %v313_v30, %v314_v31  ;;  %v242_v40 = vld [vmem:[%s823_s20 + $0x288] sm:$0xff]  ;;  %v208_v42 = vld [vmem:[%s823_s20 + $0x178] sm:$0xff]  ;;  %v223_v43 = vld [vmem:[%s823_s20 + $0x1f0] sm:$0xff]  ;;  %v321_v51 = vmax.f32 %v225_v36, %v241_v38 }
  0x28   : > { %427 = vrot.lane.b32.xlu2 %v889_v63, %s773_s21  ;;  %v224_v45 = vld [vmem:[%s823_s20 + $0x1f8] sm:$0xff]  ;;  %v937_v46 = vmax.f32 %v311_v32, %v312_v34  ;;  %v205_v47 = vld [vmem:[%s823_s20 + $0x160] sm:$0xff]  ;;  %v206_v48 = vld [vmem:[%s823_s20 + $0x168] sm:$0xff]  ;;  %v322_v52 = vmax.f32 %v226_v37, %v242_v40  ;;  %v319_v54 = vmax.f32 %v207_v41, %v223_v43 }
  0x29   : > { %431 = vrot.lane.b32.xlu1 %v877_v53, %s773_s21  ;;  %v221_v49 = vld [vmem:[%s823_s20 + $0x1e0] sm:$0xff]  ;;  %v222_v50 = vld [vmem:[%s823_s20 + $0x1e8] sm:$0xff]  ;;  %v320_v55 = vmax.f32 %v208_v42, %v224_v45  ;;  %v231_v60 = vld [vmem:[%s823_s20 + $0x230] sm:$0xff] }
  0x2a   : > { %v317_v56 = vmax.f32 %v205_v47, %v221_v49  ;;  %v318_v58 = vmax.f32 %v206_v48, %v222_v50  ;;  %v949_v59 = vmax.f32 %v321_v51, %v322_v52  ;;  %v232_v61 = vld [vmem:[%s823_s20 + $0x238] sm:$0xff]  ;;  %v247_v62 = vld [vmem:[%s823_s20 + $0x2b0] sm:$0xff]  ;;  %v229_v2 = vld [vmem:[%s823_s20 + $0x220] sm:$0xff] }
  0x2b   : > { %429 = vrot.lane.b32.xlu0 %v882_v57, %s773_s21  ;;  %v954_v0 = vmax.f32 %v319_v54, %v320_v55  ;;  %v248_v1 = vld [vmem:[%s823_s20 + $0x2b8] sm:$0xff]  ;;  %v230_v3 = vld [vmem:[%s823_s20 + $0x228] sm:$0xff]  ;;  %v245_v4 = vld [vmem:[%s823_s20 + $0x2a0] sm:$0xff]  ;;  %v327_v12 = vmax.f32 %v231_v60, %v247_v62 }
  0x2c   : > { %v246_v5 = vld [vmem:[%s823_s20 + $0x2a8] sm:$0xff]  ;;  %v961_v6 = vmax.f32 %v317_v56, %v318_v58  ;;  %v227_v7 = vld [vmem:[%s823_s20 + $0x210] sm:$0xff]  ;;  %v228_v8 = vld [vmem:[%s823_s20 + $0x218] sm:$0xff]  ;;  %v328_v13 = vmax.f32 %v232_v61, %v248_v1  ;;  %v325_v15 = vmax.f32 %v229_v2, %v245_v4 }
  0x2d   : > { %v243_v9 = vld [vmem:[%s823_s20 + $0x290] sm:$0xff]  ;;  %v244_v11 = vld [vmem:[%s823_s20 + $0x298] sm:$0xff]  ;;  %v326_v17 = vmax.f32 %v230_v3, %v246_v5  ;;  %v237_v23 = vld [vmem:[%s823_s20 + $0x260] sm:$0xff] }
  0x2e   : > { %v323_v18 = vmax.f32 %v227_v7, %v243_v9  ;;  %v324_v19 = vmax.f32 %v228_v8, %v244_v11  ;;  %v973_v21 = vmax.f32 %v327_v12, %v328_v13  ;;  %v238_v24 = vld [vmem:[%s823_s20 + $0x268] sm:$0xff]  ;;  %v253_v25 = vld [vmem:[%s823_s20 + $0x2e0] sm:$0xff]  ;;  %v235_v28 = vld [vmem:[%s823_s20 + $0x250] sm:$0xff] }
  0x2f   : > { %v978_v26 = vmax.f32 %v325_v15, %v326_v17  ;;  %v254_v27 = vld [vmem:[%s823_s20 + $0x2e8] sm:$0xff]  ;;  %v236_v30 = vld [vmem:[%s823_s20 + $0x258] sm:$0xff]  ;;  %v251_v31 = vld [vmem:[%s823_s20 + $0x2d0] sm:$0xff]  ;;  %v333_v41 = vmax.f32 %v237_v23, %v253_v25 }
  0x30   : > { %433 = vrot.lane.b32.xlu2 %v913_v22, %s773_s21  ;;  %v252_v32 = vld [vmem:[%s823_s20 + $0x2d8] sm:$0xff]  ;;  %v985_v34 = vmax.f32 %v323_v18, %v324_v19  ;;  %v233_v36 = vld [vmem:[%s823_s20 + $0x240] sm:$0xff]  ;;  %v234_v37 = vld [vmem:[%s823_s20 + $0x248] sm:$0xff]  ;;  %v334_v42 = vmax.f32 %v238_v24, %v254_v27  ;;  %v331_v43 = vmax.f32 %v235_v28, %v251_v31 }
  0x31   : > { %437 = vrot.lane.b32.xlu1 %v901_v10, %s773_s21  ;;  %v249_v38 = vld [vmem:[%s823_s20 + $0x2c0] sm:$0xff]  ;;  %v250_v40 = vld [vmem:[%s823_s20 + $0x2c8] sm:$0xff]  ;;  %v332_v45 = vmax.f32 %v236_v30, %v252_v32  ;;  %v259_v50 = vld [vmem:[%s823_s20 + $0x310] sm:$0xff] }
  0x32   : > { %v329_v47 = vmax.f32 %v233_v36, %v249_v38  ;;  %v330_v48 = vmax.f32 %v234_v37, %v250_v40  ;;  %v997_v49 = vmax.f32 %v333_v41, %v334_v42  ;;  %v260_v51 = vld [vmem:[%s823_s20 + $0x318] sm:$0xff]  ;;  %v275_v52 = vld [vmem:[%s823_s20 + $0x390] sm:$0xff]  ;;  %v257_v56 = vld [vmem:[%s823_s20 + $0x300] sm:$0xff] }
  0x33   : > { %435 = vrot.lane.b32.xlu0 %v906_v14, %s773_s21  ;;  %v1002_v54 = vmax.f32 %v331_v43, %v332_v45  ;;  %v276_v55 = vld [vmem:[%s823_s20 + $0x398] sm:$0xff]  ;;  %v258_v58 = vld [vmem:[%s823_s20 + $0x308] sm:$0xff]  ;;  %v273_v60 = vld [vmem:[%s823_s20 + $0x380] sm:$0xff]  ;;  %v339_v5 = vmax.f32 %v259_v50, %v275_v52 }
  0x34   : > { %v274_v61 = vld [vmem:[%s823_s20 + $0x388] sm:$0xff]  ;;  %v1009_v62 = vmax.f32 %v329_v47, %v330_v48  ;;  %v239_v1 = vld [vmem:[%s823_s20 + $0x270] sm:$0xff]  ;;  %v240_v2 = vld [vmem:[%s823_s20 + $0x278] sm:$0xff]  ;;  %v340_v7 = vmax.f32 %v260_v51, %v276_v55  ;;  %v337_v8 = vmax.f32 %v257_v56, %v273_v60 }
  0x35   : > { %v255_v3 = vld [vmem:[%s823_s20 + $0x2f0] sm:$0xff]  ;;  %v256_v4 = vld [vmem:[%s823_s20 + $0x2f8] sm:$0xff]  ;;  %v338_v9 = vmax.f32 %v258_v58, %v274_v61  ;;  %v265_v15 = vld [vmem:[%s823_s20 + $0x340] sm:$0xff] }
  0x36   : > { %v335_v11 = vmax.f32 %v239_v1, %v255_v3  ;;  %v336_v12 = vmax.f32 %v240_v2, %v256_v4  ;;  %v1021_v13 = vmax.f32 %v339_v5, %v340_v7  ;;  %v266_v17 = vld [vmem:[%s823_s20 + $0x348] sm:$0xff]  ;;  %v281_v18 = vld [vmem:[%s823_s20 + $0x3c0] sm:$0xff]  ;;  %v263_v24 = vld [vmem:[%s823_s20 + $0x330] sm:$0xff] }
  0x37   : > { %v1026_v19 = vmax.f32 %v337_v8, %v338_v9  ;;  %v282_v23 = vld [vmem:[%s823_s20 + $0x3c8] sm:$0xff]  ;;  %v264_v25 = vld [vmem:[%s823_s20 + $0x338] sm:$0xff]  ;;  %v279_v27 = vld [vmem:[%s823_s20 + $0x3b0] sm:$0xff]  ;;  %v345_v38 = vmax.f32 %v265_v15, %v281_v18 }
  0x38   : > { %439 = vrot.lane.b32.xlu2 %v937_v46, %s773_s21  ;;  %v280_v28 = vld [vmem:[%s823_s20 + $0x3b8] sm:$0xff]  ;;  %v1033_v30 = vmax.f32 %v335_v11, %v336_v12  ;;  %v261_v31 = vld [vmem:[%s823_s20 + $0x320] sm:$0xff]  ;;  %v262_v32 = vld [vmem:[%s823_s20 + $0x328] sm:$0xff]  ;;  %v346_v40 = vmax.f32 %v266_v17, %v282_v23  ;;  %v343_v41 = vmax.f32 %v263_v24, %v279_v27 }
  0x39   : > { %443 = vrot.lane.b32.xlu1 %v925_v35, %s773_s21  ;;  %v277_v36 = vld [vmem:[%s823_s20 + $0x3a0] sm:$0xff]  ;;  %v278_v37 = vld [vmem:[%s823_s20 + $0x3a8] sm:$0xff]  ;;  %v344_v42 = vmax.f32 %v264_v25, %v280_v28  ;;  %v271_v48 = vld [vmem:[%s823_s20 + $0x370] sm:$0xff] }
  0x3a   : > { %v341_v43 = vmax.f32 %v261_v31, %v277_v36  ;;  %v342_v45 = vmax.f32 %v262_v32, %v278_v37  ;;  %v1045_v47 = vmax.f32 %v345_v38, %v346_v40  ;;  %v272_v50 = vld [vmem:[%s823_s20 + $0x378] sm:$0xff]  ;;  %v287_v51 = vld [vmem:[%s823_s20 + $0x3f0] sm:$0xff]  ;;  %v269_v56 = vld [vmem:[%s823_s20 + $0x360] sm:$0xff] }
  0x3b   : > { %441 = vrot.lane.b32.xlu0 %v930_v39, %s773_s21  ;;  %v1050_v52 = vmax.f32 %v343_v41, %v344_v42  ;;  %v288_v55 = vld [vmem:[%s823_s20 + $0x3f8] sm:$0xff]  ;;  %v270_v58 = vld [vmem:[%s823_s20 + $0x368] sm:$0xff]  ;;  %v285_v60 = vld [vmem:[%s823_s20 + $0x3e0] sm:$0xff]  ;;  %v351_v7 = vmax.f32 %v271_v48, %v287_v51 }
  0x3c   : > { %v286_v61 = vld [vmem:[%s823_s20 + $0x3e8] sm:$0xff]  ;;  %v1057_v1 = vmax.f32 %v341_v43, %v342_v45  ;;  %v267_v2 = vld [vmem:[%s823_s20 + $0x350] sm:$0xff]  ;;  %v268_v3 = vld [vmem:[%s823_s20 + $0x358] sm:$0xff]  ;;  %v352_v8 = vmax.f32 %v272_v50, %v288_v55  ;;  %v349_v9 = vmax.f32 %v269_v56, %v285_v60 }
  0x3d   : > { %v283_v4 = vld [vmem:[%s823_s20 + $0x3d0] sm:$0xff]  ;;  %v284_v5 = vld [vmem:[%s823_s20 + $0x3d8] sm:$0xff]  ;;  %v350_v11 = vmax.f32 %v270_v58, %v286_v61 }
  0x3e   : > { %v347_v12 = vmax.f32 %v267_v2, %v283_v4  ;;  %v348_v15 = vmax.f32 %v268_v3, %v284_v5  ;;  %v1069_v17 = vmax.f32 %v351_v7, %v352_v8 }
  0x3f   : > { %v1071_v18 = vmax.f32 %v349_v9, %v350_v11 }
  0x40   : > { %445 = vrot.lane.b32.xlu2 %v961_v6, %s773_s21  ;;  %v1073_v23 = vmax.f32 %v347_v12, %v348_v15 }
  0x41   : > { %449 = vrot.lane.b32.xlu1 %v949_v59, %s773_s21 }
  0x43   : > { %447 = vrot.lane.b32.xlu0 %v954_v0, %s773_s21 }
  0x48   : > { %451 = vrot.lane.b32.xlu2 %v985_v34, %s773_s21 }
  0x49   : > { %455 = vrot.lane.b32.xlu1 %v973_v21, %s773_s21 }
  0x4b   : > { %453 = vrot.lane.b32.xlu0 %v978_v26, %s773_s21 }
  0x50   : > { %457 = vrot.lane.b32.xlu2 %v1009_v62, %s773_s21 }
  0x51   : > { %461 = vrot.lane.b32.xlu1 %v997_v49, %s773_s21 }
  0x53   : > { %459 = vrot.lane.b32.xlu0 %v1002_v54, %s773_s21 }
  0x58   : > { %463 = vrot.lane.b32.xlu2 %v1033_v30, %s773_s21 }
  0x59   : > { %467 = vrot.lane.b32.xlu1 %v1021_v13, %s773_s21 }
  0x5b   : > { %465 = vrot.lane.b32.xlu0 %v1026_v19, %s773_s21 }
  0x60   : > { %469 = vrot.lane.b32.xlu2 %v1057_v1, %s773_s21 }
  0x61   : > { %473 = vrot.lane.b32.xlu1 %v1045_v47, %s773_s21 }
  0x63   : > { %471 = vrot.lane.b32.xlu0 %v1050_v52, %s773_s21 }
  0x68   : > { %475 = vrot.lane.b32.xlu2 %v1073_v23, %s773_s21 }
  0x69   : > { %479 = vrot.lane.b32.xlu1 %v1069_v17, %s773_s21 }
  0x6b   : > { %477 = vrot.lane.b32.xlu0 %v1071_v18, %s773_s21 }
  0x7a   : > { %v426_v24 = vpop.permute.xlu2 %425 }
  0x7b   : > { %v517_v25 = vmax.f32 %v867_v44, %v426_v24 }
  0x7d   : > { %550 = vst.msk [vmem:[%s1087_s29 + $0x20] sm:$0xff] %vm545_vm0, %v517_v25 }
  0x82   : > { %v428_v27 = vpop.permute.xlu2 %427 }
  0x83   : > { %v518_v28 = vmax.f32 %v889_v63, %v428_v27 }
  0x85   : > { %551 = vst.msk [vmem:[%s1087_s29 + $0x28] sm:$0xff] %vm545_vm0, %v518_v28 }
  0x8a   : > { %v434_v37 = vpop.permute.xlu2 %433 }
  0x8b   : > { %v422_v44 = vpop.permute.xlu1 %421  ;;  %v521_v38 = vmax.f32 %v913_v22, %v434_v37 }
  0x8c   : > { %v515_v31 = vmax.f32 %v837_v16, %v422_v44 }
  0x8d   : > { %v418_v32 = vpop.permute.xlu0 %417  ;;  %554 = vst.msk [vmem:[%s1087_s29 + $0x40] sm:$0xff] %vm545_vm0, %v521_v38 }
  0x8e   : > { %v513_v36 = vmax.f32 %v842_v20, %v418_v32  ;;  %548 = vst.msk [vmem:[%s1087_s29 + $0x10] sm:$0xff] %vm545_vm0, %v515_v31 }
  0x90   : > { %546 = vst.msk [vmem:[%s1087_s29] sm:$0xff] %vm545_vm0, %v513_v36 }
  0x92   : > { %v440_v42 = vpop.permute.xlu2 %439 }
  0x93   : > { %v424_v63 = vpop.permute.xlu1 %423  ;;  %v524_v20 = vmax.f32 %v937_v46, %v440_v42 }
  0x94   : > { %v516_v40 = vmax.f32 %v852_v29, %v424_v63 }
  0x95   : > { %v420_v16 = vpop.permute.xlu0 %419  ;;  %557 = vst.msk [vmem:[%s1087_s29 + $0x58] sm:$0xff] %vm545_vm0, %v524_v20 }
  0x96   : > { %v514_v41 = vmax.f32 %v857_v33, %v420_v16  ;;  %549 = vst.msk [vmem:[%s1087_s29 + $0x18] sm:$0xff] %vm545_vm0, %v516_v40 }
  0x98   : > { %547 = vst.msk [vmem:[%s1087_s29 + $0x8] sm:$0xff] %vm545_vm0, %v514_v41 }
  0x9a   : > { %v446_v48 = vpop.permute.xlu2 %445 }
  0x9b   : > { %v432_v22 = vpop.permute.xlu1 %431  ;;  %v527_v33 = vmax.f32 %v961_v6, %v446_v48 }
  0x9c   : > { %v520_v43 = vmax.f32 %v877_v53, %v432_v22 }
  0x9d   : > { %v430_v29 = vpop.permute.xlu0 %429  ;;  %560 = vst.msk [vmem:[%s1087_s29 + $0x70] sm:$0xff] %vm545_vm0, %v527_v33 }
  0x9e   : > { %v519_v45 = vmax.f32 %v882_v57, %v430_v29  ;;  %553 = vst.msk [vmem:[%s1087_s29 + $0x38] sm:$0xff] %vm545_vm0, %v520_v43 }
  0xa0   : > { %552 = vst.msk [vmem:[%s1087_s29 + $0x30] sm:$0xff] %vm545_vm0, %v519_v45 }
  0xa2   : > { %v452_v55 = vpop.permute.xlu2 %451 }
  0xa3   : > { %v438_v46 = vpop.permute.xlu1 %437  ;;  %v530_v57 = vmax.f32 %v985_v34, %v452_v55 }
  0xa4   : > { %v523_v50 = vmax.f32 %v901_v10, %v438_v46 }
  0xa5   : > { %v436_v53 = vpop.permute.xlu0 %435  ;;  %563 = vst.msk [vmem:[%s1087_s29 + $0x88] sm:$0xff] %vm545_vm0, %v530_v57 }
  0xa6   : > { %v522_v51 = vmax.f32 %v906_v14, %v436_v53  ;;  %556 = vst.msk [vmem:[%s1087_s29 + $0x50] sm:$0xff] %vm545_vm0, %v523_v50 }
  0xa8   : > { %555 = vst.msk [vmem:[%s1087_s29 + $0x48] sm:$0xff] %vm545_vm0, %v522_v51 }
  0xaa   : > { %v458_v60 = vpop.permute.xlu2 %457 }
  0xab   : > { %v444_v6 = vpop.permute.xlu1 %443  ;;  %v533_v14 = vmax.f32 %v1009_v62, %v458_v60 }
  0xac   : > { %v526_v56 = vmax.f32 %v925_v35, %v444_v6 }
  0xad   : > { %v442_v10 = vpop.permute.xlu0 %441  ;;  %566 = vst.msk [vmem:[%s1087_s29 + $0xa0] sm:$0xff] %vm545_vm0, %v533_v14 }
  0xae   : > { %v525_v58 = vmax.f32 %v930_v39, %v442_v10  ;;  %559 = vst.msk [vmem:[%s1087_s29 + $0x68] sm:$0xff] %vm545_vm0, %v526_v56 }
  0xb0   : > { %558 = vst.msk [vmem:[%s1087_s29 + $0x60] sm:$0xff] %vm545_vm0, %v525_v58 }
  0xb2   : > { %v464_v3 = vpop.permute.xlu2 %463 }
  0xb3   : > { %v450_v34 = vpop.permute.xlu1 %449  ;;  %v536_v39 = vmax.f32 %v1033_v30, %v464_v3 }
  0xb4   : > { %v529_v61 = vmax.f32 %v949_v59, %v450_v34 }
  0xb5   : > { %v448_v35 = vpop.permute.xlu0 %447  ;;  %569 = vst.msk [vmem:[%s1087_s29 + $0xb8] sm:$0xff] %vm545_vm0, %v536_v39 }
  0xb6   : > { %v528_v2 = vmax.f32 %v954_v0, %v448_v35  ;;  %562 = vst.msk [vmem:[%s1087_s29 + $0x80] sm:$0xff] %vm545_vm0, %v529_v61 }
  0xb8   : > { %561 = vst.msk [vmem:[%s1087_s29 + $0x78] sm:$0xff] %vm545_vm0, %v528_v2 }
  0xba   : > { %v470_v7 = vpop.permute.xlu2 %469 }
  0xbb   : > { %v456_v62 = vpop.permute.xlu1 %455  ;;  %v539_v0 = vmax.f32 %v1057_v1, %v470_v7 }
  0xbc   : > { %v532_v4 = vmax.f32 %v973_v21, %v456_v62 }
  0xbd   : > { %v454_v59 = vpop.permute.xlu0 %453  ;;  %572 = vst.msk [vmem:[%s1087_s29 + $0xd0] sm:$0xff] %vm545_vm0, %v539_v0 }
  0xbe   : > { %v531_v5 = vmax.f32 %v978_v26, %v454_v59  ;;  %565 = vst.msk [vmem:[%s1087_s29 + $0x98] sm:$0xff] %vm545_vm0, %v532_v4 }
  0xc0   : > { %564 = vst.msk [vmem:[%s1087_s29 + $0x90] sm:$0xff] %vm545_vm0, %v531_v5 }
  0xc2   : > { %v476_v11 = vpop.permute.xlu2 %475 }
  0xc3   : > { %v462_v30 = vpop.permute.xlu1 %461  ;;  %v542_v26 = vmax.f32 %v1073_v23, %v476_v11 }
  0xc4   : > { %v535_v8 = vmax.f32 %v997_v49, %v462_v30 }
  0xc5   : > { %v460_v9 = vpop.permute.xlu0 %459  ;;  %575 = vst.msk [vmem:[%s1087_s29 + $0xe8] sm:$0xff] %vm545_vm0, %v542_v26 }
  0xc6   : > { %v534_v21 = vmax.f32 %v1002_v54, %v460_v9  ;;  %568 = vst.msk [vmem:[%s1087_s29 + $0xb0] sm:$0xff] %vm545_vm0, %v535_v8 }
  0xc8   : > { %567 = vst.msk [vmem:[%s1087_s29 + $0xa8] sm:$0xff] %vm545_vm0, %v534_v21 }
  0xcb   : > { %v468_v1 = vpop.permute.xlu1 %467 }
  0xcc   : > { %v538_v12 = vmax.f32 %v1021_v13, %v468_v1 }
  0xcd   : > { %v466_v49 = vpop.permute.xlu0 %465 }
  0xce   : > { %v537_v15 = vmax.f32 %v1026_v19, %v466_v49  ;;  %571 = vst.msk [vmem:[%s1087_s29 + $0xc8] sm:$0xff] %vm545_vm0, %v538_v12 }
  0xd0   : > { %570 = vst.msk [vmem:[%s1087_s29 + $0xc0] sm:$0xff] %vm545_vm0, %v537_v15 }
  0xd3   : > { %v474_v54 = vpop.permute.xlu1 %473 }
  0xd4   : > { %v541_v24 = vmax.f32 %v1045_v47, %v474_v54 }
  0xd5   : > { %v472_v23 = vpop.permute.xlu0 %471 }
  0xd6   : > { %v540_v25 = vmax.f32 %v1050_v52, %v472_v23  ;;  %574 = vst.msk [vmem:[%s1087_s29 + $0xe0] sm:$0xff] %vm545_vm0, %v541_v24 }
  0xd8   : > { %573 = vst.msk [vmem:[%s1087_s29 + $0xd8] sm:$0xff] %vm545_vm0, %v540_v25 }
  0xdb   : > { %v480_v27 = vpop.permute.xlu1 %479 }
  0xdc   : > { %v544_v13 = vmax.f32 %v1069_v17, %v480_v27 }
  0xdd   : > { %v478_v28 = vpop.permute.xlu0 %477 }
  0xde   : > { %v543_v19 = vmax.f32 %v1071_v18, %v478_v28  ;;  %577 = vst.msk [vmem:[%s1087_s29 + $0xf8] sm:$0xff] %vm545_vm0, %v544_v13 }
  0xe0   : > { %576 = vst.msk [vmem:[%s1087_s29 + $0xf0] sm:$0xff] %vm545_vm0, %v543_v19 }
  0xe1 PF: > { %s11_s10 = sadd.s32 1, %s771_s10   ;;  %s1201_s6 = smov %s763_s8 }
  0xe2   : > { %p8_p8 = scmp.ge.s32.totalorder %s11_s10, 6   ;;  %s1202_s7 = smov %s767_s9 }
  0xe3   : > { %s1203_s8 = smov %s1206_s11  ;;  %s1204_s9 = smov %s1210_s12 }
  0xe4   :  { %10 = sbr.rel (!%p8_p8) target bundleno = 3 (0x3), region = 54 }

</bundles_post_ra>
